<compile_context>
chip_gen: v7x
topology: tpu7x:2x2x1
jax: 0.10.0
libtpu: 0.0.40
codegen_flags: <defaults>
</compile_context>

<pallas_src>
import functools

import jax
import jax.numpy as jnp
from jax.experimental import pallas as pl
from jax.experimental.pallas import tpu as pltpu


def _round_up(x, n):
    return ((x + n - 1) // n) * n


def _vmem_capacity_bytes():
    """Per-core VMEM capacity; conservative 64 MiB (v7x) fallback."""
    try:
        cap = int(getattr(pltpu.get_tpu_info(), "vmem_capacity_bytes", 0))
        if cap > 0:
            return cap
    except Exception:
        pass
    return 64 * 1024 * 1024


def _vmem_estimate(tile_m, tile_n, in_f, rank, dtype_bytes):
    x_bufs = 2 * tile_m * in_f * dtype_bytes                   # double-buffered x tiles
    w_bufs = 2 * (in_f * rank + rank * tile_n) * dtype_bytes   # A_T / B_T (2 bufs worst case)
    o_bufs = 2 * tile_m * tile_n * dtype_bytes                 # double-buffered out tiles
    scratch = tile_m * rank * dtype_bytes                      # cached (x @ A_T) * scaling
    body = tile_m * rank * 4 + tile_m * tile_n * 4             # f32 intermediates in the body
    return x_bufs + w_bufs + o_bufs + scratch + body


def _choose_tiles(m, in_f, out_p, rank, dtype_bytes, vmem_cap):
    budget = (3 * vmem_cap) // 4          # ~48 MiB on v7x, ~96 MiB on v5e/v6e
    tile_m_cap = 1024 if vmem_cap >= 96 * 1024 * 1024 else 512

    if m <= tile_m_cap:
        # >= 2 M steps when possible so the 'parallel' M axis feeds both v7x
        # TensorCores (one extra ~0.35us step is harmless on single-TC chips).
        tile_m = max(8, _round_up(pl.cdiv(m, 2), 8))
    else:
        tile_m = tile_m_cap

    tile_n = min(out_p, 2048)

    # Fit the VMEM budget: shrink the N tile first (keeps the HBM streaming
    # efficiency of the M tiles), then the M tile, but not below 256 rows.
    while _vmem_estimate(tile_m, tile_n, in_f, rank, dtype_bytes) > budget:
        if tile_n > 128:
            tile_n = max(128, _round_up(tile_n // 2, 128))
        elif tile_m > 256:
            tile_m = max(256, _round_up(tile_m // 2, 8))
        else:
            break
    return tile_m, tile_n


def _lora_kernel(x_ref, a_ref, b_ref, o_ref, xa_ref, *, scaling):
    # Grid = (M tiles, N tiles), N innermost.  The x block index is constant
    # across the inner N axis, so (x @ A_T) * scaling is computed once per M
    # tile (j == 0), cached in VMEM scratch, and reused for every N tile.
    @pl.when(pl.program_id(1) == 0)
    def _():
        xa = jnp.dot(x_ref[...], a_ref[...], preferred_element_type=jnp.float32)
        # Scale the small (tile_m, rank) intermediate (out/rank x fewer mults
        # than scaling the output) and cast back to the input dtype so bf16
        # inputs hit the native bf16 MXU path (f32 accumulation kept).
        xa_ref[...] = (xa * scaling).astype(xa_ref.dtype)

    y = jnp.dot(xa_ref[...], b_ref[...], preferred_element_type=jnp.float32)
    o_ref[...] = y.astype(o_ref.dtype)


def lora_forward(x, a_t, b_t, scaling):
    """x: (batch, seq, in_features); a_t: (in, rank); b_t: (rank, out)."""
    batch, seq, in_features = x.shape
    rank, out_features = b_t.shape
    m = batch * seq
    x2d = x.reshape(m, in_features)
    dtype_bytes = jnp.dtype(x.dtype).itemsize

    # Lane-dense output: only pad out_features (and slice back afterwards) when
    # it is not already 128-aligned; the aligned transformer case is a no-op.
    out_p = _round_up(out_features, 128)
    if out_p != out_features:
        b_t = jnp.pad(b_t, ((0, 0), (0, out_p - out_features)))

    vmem_cap = _vmem_capacity_bytes()
    tile_m, tile_n = _choose_tiles(m, in_features, out_p, rank, dtype_bytes, vmem_cap)

    # No M padding: grid runs over the unpadded row count; Pallas clips the
    # ragged last block (tail reads are garbage but rows are independent, tail
    # writes are clipped), avoiding extra HBM pad/slice passes over x and y.
    # NOTE: do not add cross-row reductions inside the kernel without masking.
    grid = (pl.cdiv(m, tile_m), pl.cdiv(out_p, tile_n))

    est = _vmem_estimate(tile_m, tile_n, in_features, rank, dtype_bytes)
    vmem_limit = int(min((4 * vmem_cap) // 5,            # ~51 MiB v7x / ~102 MiB v5e,v6e
                         max(2 * est, 32 * 1024 * 1024)))

    out2d = pl.pallas_call(
        functools.partial(_lora_kernel, scaling=scaling),
        out_shape=jax.ShapeDtypeStruct((m, out_p), x.dtype),
        grid_spec=pltpu.PrefetchScalarGridSpec(
            num_scalar_prefetch=0,
            grid=grid,
            in_specs=[
                pl.BlockSpec((tile_m, in_features), lambda i, j: (i, 0)),  # streamed
                pl.BlockSpec((in_features, rank), lambda i, j: (0, 0)),    # resident
                pl.BlockSpec((rank, tile_n), lambda i, j: (0, j)),         # N-tiled
            ],
            out_specs=pl.BlockSpec((tile_m, tile_n), lambda i, j: (i, j)),
            scratch_shapes=[pltpu.VMEM((tile_m, rank), x.dtype)],
        ),
        compiler_params=pltpu.CompilerParams(
            # M axis 'parallel' -> v7x shards it across its 2 TensorCores
            # (harmless on v5e/v6e); N is the inner sequential axis reusing the
            # cached x @ A_T scratch.
            dimension_semantics=("parallel", "arbitrary"),
            vmem_limit_bytes=vmem_limit,
        ),
    )(x2d, a_t, b_t)

    if out_p != out_features:
        out2d = out2d[:, :out_features]
    return out2d.reshape(batch, seq, out_features)


def lora_reference(x, a_t, b_t, scaling):
    return (x @ a_t @ b_t) * scaling


if __name__ == "__main__":
    # Module hyper-params (small, consistent with the forward semantics)
    in_features, out_features, rank, alpha = 32, 64, 8, 1.0
    scaling = alpha / rank
    batch, seq = 2, 8

    key = jax.random.PRNGKey(0)
    kx, ka, kb, kx2, kb2 = jax.random.split(key, 5)

    x = jax.random.normal(kx, (batch, seq, in_features), dtype=jnp.float32)

    # Parameter init, matching nn.Module.__init__:
    #   lora_A.weight: (rank, in_features), kaiming_uniform_(a=sqrt(5))
    #     -> bound = sqrt(6 / ((1 + 5) * fan_in)) = 1 / sqrt(in_features)
    #   lora_B.weight: (out_features, rank), zeros
    bound = 1.0 / (in_features ** 0.5)
    lora_A_weight = jax.random.uniform(
        ka, (rank, in_features), minval=-bound, maxval=bound, dtype=jnp.float32)
    lora_B_weight = jnp.zeros((out_features, rank), dtype=jnp.float32)

    a_t = lora_A_weight.T   # (in_features, rank)
    b_t = lora_B_weight.T   # (rank, out_features)

    # 1) Faithful init (B == 0 -> zeros); out=64 exercises the pad+slice path.
    out = jax.block_until_ready(lora_forward(x, a_t, b_t, scaling))
    ref = lora_reference(x, a_t, b_t, scaling)
    assert out.shape == (batch, seq, out_features)
    assert jnp.allclose(out, ref, atol=1e-5), "mismatch vs reference (zero-B case)"

    # 2) Non-zero B so both matmuls are actually exercised.
    b_nz = jax.random.normal(kb, (rank, out_features), dtype=jnp.float32) * 0.02
    out_nz = jax.block_until_ready(lora_forward(x, a_t, b_nz, scaling))
    ref_nz = lora_reference(x, a_t, b_nz, scaling)
    assert jnp.allclose(out_nz, ref_nz, atol=1e-4, rtol=1e-4), "mismatch (non-zero B)"

    # 3) 128-aligned out_features: no pad / no column slice path.
    b_al = jax.random.normal(kb2, (rank, 128), dtype=jnp.float32) * 0.02
    out_al = jax.block_until_ready(lora_forward(x, a_t, b_al, scaling))
    ref_al = lora_reference(x, a_t, b_al, scaling)
    assert out_al.shape == (batch, seq, 128)
    assert jnp.allclose(out_al, ref_al, atol=1e-4, rtol=1e-4), "mismatch (aligned out)"

    # 4) Larger M (3*200 = 600): multiple M tiles + ragged (unpadded) last M block.
    xb = jax.random.normal(kx2, (3, 200, in_features), dtype=jnp.float32)
    out_big = jax.block_until_ready(lora_forward(xb, a_t, b_nz, scaling))
    ref_big = lora_reference(xb, a_t, b_nz, scaling)
    assert out_big.shape == (3, 200, out_features)
    assert jnp.allclose(out_big, ref_big, atol=1e-4, rtol=1e-4), "mismatch (tiled M)"

    # 5) Wide out_features (2560 > 2048 tile cap): exercises the N grid axis,
    #    the cached x @ A_T scratch across N steps, and a ragged last N block.
    b_wide = jax.random.normal(kb2, (rank, 2560), dtype=jnp.float32) * 0.02
    out_w = jax.block_until_ready(lora_forward(x, a_t, b_wide, scaling))
    ref_w = lora_reference(x, a_t, b_wide, scaling)
    assert out_w.shape == (batch, seq, 2560)
    assert jnp.allclose(out_w, ref_w, atol=1e-4, rtol=1e-4), "mismatch (N-tiled)"

    print("KERNEL_OK")
</pallas_src>

<mosaic_0001>
module attributes {stable_mosaic.version = 11 : i64} {
  func.func @_lora_kernel(%arg0: i32, %arg1: i32, %arg2: memref<8x32xf32, #tpu.memory_space<vmem>>, %arg3: memref<32x8xf32, #tpu.memory_space<vmem>>, %arg4: memref<8x128xf32, #tpu.memory_space<vmem>>, %arg5: memref<8x128xf32, #tpu.memory_space<vmem>>, %arg6: memref<8x8xf32, #tpu.memory_space<vmem>>) attributes {dimension_semantics = [#tpu.dimension_semantics<parallel>, #tpu.dimension_semantics<arbitrary>], iteration_bounds = array<i64: 2, 1>, scalar_prefetch = 0 : i64, scratch_operands = 1 : i64, tpu.core_type = #tpu.core_type<tc>, window_params = [{transform_indices = @transform_0, window_bounds = array<i64: 8, 32>}, {pipeline_mode = #tpu.pipeline_mode<synchronous>, transform_indices = @transform_1, window_bounds = array<i64: 32, 8>}, {transform_indices = @transform_2, window_bounds = array<i64: 8, 128>}, {transform_indices = @transform_3, window_bounds = array<i64: 8, 128>}]} {
    %c0_i32 = arith.constant 0 : i32
    %0 = arith.cmpi eq, %arg1, %c0_i32 : i32
    %1 = arith.extui %0 : i1 to i32
    %c0_i32_0 = arith.constant 0 : i32
    %2 = arith.cmpi ne, %1, %c0_i32_0 : i32
    scf.if %2 {
      %c0_6 = arith.constant 0 : index
      %c0_7 = arith.constant 0 : index
      %7 = vector.load %arg2[%c0_6, %c0_7] : memref<8x32xf32, #tpu.memory_space<vmem>>, vector<8x32xf32>
      %c0_8 = arith.constant 0 : index
      %c0_9 = arith.constant 0 : index
      %8 = vector.load %arg3[%c0_8, %c0_9] : memref<32x8xf32, #tpu.memory_space<vmem>>, vector<32x8xf32>
      %cst_10 = arith.constant dense<0.000000e+00> : vector<8x8xf32>
      %9 = tpu.matmul %7, %8, %cst_10 {dimension_numbers = #tpu.dot_dimension_numbers<[1], [0], [0], [1], [0, 0, 1, 1], [], []>} : vector<8x32xf32>, vector<32x8xf32>, vector<8x8xf32> -> vector<8x8xf32>
      %cst_11 = arith.constant 1.250000e-01 : f32
      %10 = vector.broadcast %cst_11 : f32 to vector<8x8xf32>
      %11 = arith.mulf %9, %10 : vector<8x8xf32>
      %c0_12 = arith.constant 0 : index
      %c0_13 = arith.constant 0 : index
      %12 = vector.load %arg6[%c0_12, %c0_13] : memref<8x8xf32, #tpu.memory_space<vmem>>, vector<8x8xf32>
      tpu.vector_store %arg6[%c0_12, %c0_13], %11 {strides = array<i32>} : memref<8x8xf32, #tpu.memory_space<vmem>>, vector<8x8xf32>,
    } else {
    }
    %c0 = arith.constant 0 : index
    %c0_1 = arith.constant 0 : index
    %3 = vector.load %arg6[%c0, %c0_1] : memref<8x8xf32, #tpu.memory_space<vmem>>, vector<8x8xf32>
    %c0_2 = arith.constant 0 : index
    %c0_3 = arith.constant 0 : index
    %4 = vector.load %arg4[%c0_2, %c0_3] : memref<8x128xf32, #tpu.memory_space<vmem>>, vector<8x128xf32>
    %cst = arith.constant dense<0.000000e+00> : vector<8x128xf32>
    %5 = tpu.matmul %3, %4, %cst {dimension_numbers = #tpu.dot_dimension_numbers<[1], [0], [0], [1], [0, 0, 1, 1], [], []>} : vector<8x8xf32>, vector<8x128xf32>, vector<8x128xf32> -> vector<8x128xf32>
    %c0_4 = arith.constant 0 : index
    %c0_5 = arith.constant 0 : index
    %6 = vector.load %arg5[%c0_4, %c0_5] : memref<8x128xf32, #tpu.memory_space<vmem>>, vector<8x128xf32>
    tpu.vector_store %arg5[%c0_4, %c0_5], %5 {strides = array<i32>} : memref<8x128xf32, #tpu.memory_space<vmem>>, vector<8x128xf32>,
    return
  }
  func.func @transform_0(%arg0: i32, %arg1: i32) -> (i32, i32) {
    %c0_i32 = arith.constant 0 : i32
    %c0_i32_0 = arith.constant 0 : i32
    return %arg0, %c0_i32 : i32, i32
  }
  func.func @transform_1(%arg0: i32, %arg1: i32) -> (i32, i32) {
    %c0_i32 = arith.constant 0 : i32
    %c0_i32_0 = arith.constant 0 : i32
    %c0_i32_1 = arith.constant 0 : i32
    return %c0_i32, %c0_i32_0 : i32, i32
  }
  func.func @transform_2(%arg0: i32, %arg1: i32) -> (i32, i32) {
    %c0_i32 = arith.constant 0 : i32
    %c0_i32_0 = arith.constant 0 : i32
    return %c0_i32, %arg1 : i32, i32
  }
  func.func @transform_3(%arg0: i32, %arg1: i32) -> (i32, i32) {
    %c0_i32 = arith.constant 0 : i32
    return %arg0, %arg1 : i32, i32
  }
}

</mosaic_0001>

<bundles_post_ra>
// kernel: tpu_custom_call.1
= control target key start
LH: loop header
LB: loop body
LE: loop exit
PB: predicated region body
PF: predicated region fallthrough
CT: control target
= control target key end

     0   :  { %8 = vsyncpa [#allocation4], 0  ;;  %s790_s0 = inlined_call_operand.vmem [shape: f32[16,32], index: 0, kind: input, shape index: {}]   ;;  %s791_s1 = inlined_call_operand.vmem [shape: f32[32,8], index: 1, kind: input, shape index: {}]   ;;  %s792_s2 = inlined_call_operand.vmem [shape: f32[8,128], index: 2, kind: input, shape index: {}]   ;;  %s793_s3 = inlined_call_operand.hbm [shape: f32[16,128], index: 3, kind: output, shape index: {}]  }
   0x1   :  { %10 = vsyncpa [#allocation4 + $0x1], 0  ;;  %s663_s12 = smov 0   ;;  %s665_s13 = smov 0  }
   0x2   :  { %s667_s14 = smov 0   ;;  %s669_s15 = smov 0  }
   0x3   :  { %s671_s16 = smov 0   ;;  %s673_s17 = smov 0  }
   0x4 LB: > { %s458_s18 = sadd.s32 4294967295, %s637_s17   ;;  %s459_s19 = sadd.s32 4294967294, %s637_s17   ;;  %s637_s17 = sphi %s673_s17, %s16_s17   ;;  %s633_s16 = sphi %s671_s16, %s800_s16   ;;  %s629_s15 = sphi %s669_s15, %s799_s15   ;;  %s625_s14 = sphi %s667_s14, %s798_s14   ;;  %s621_s13 = sphi %s665_s13, %s797_s13   ;;  %s617_s12 = sphi %s663_s12, %s796_s12  }
   0x5   : > { %s28_s20 = sadd.s32 1, %s633_s16  ;;  %s110_s21 = sadd.s32 1, %s625_s14 }
   0x6   : > { %p30_p0 = scmp.ge.s32.totalorder %s28_s20, 2  ;;  %p120_p1 = scmp.ne.s32.totalorder %s625_s14, %s621_s13 }
   0x7   : > { %p121_p2 = scmp.eq.s32.totalorder %s458_s18, 1  ;;  %p126_p3 = scmp.ne.s32.totalorder %s621_s13, %s617_s12 }
   0x8   : > { %s802_s20 = smov (%p30_p0, %s28_s20), 0  ;;  %p127_p5 = scmp.eq.s32.totalorder %s459_s19, 1 }
   0x9   : > { %p703_p4 = por %p121_p2, %p120_p1  ;;  %s105_s23 = ssub.s32 %s633_s16, %s802_s20 }
   0xa   : > { %p463_p6 = scmp.ge.s32.totalorder %s637_s17, 1  ;;  %p108_p7 = scmp.eq.s32.totalorder %s105_s23, 0 }
   0xb   : > { %p710_p8 = por %p127_p5, %p126_p3  ;;  %p162_p9 = scmp.lt.s32.totalorder %s637_s17, 3 }
   0xc   : > { %s716_s25 = scalar_select %p108_p7, %s625_s14, %s110_s21  }
   0xd   : > { %p163_p10 = pnand %p463_p6, %p162_p9 }
   0xe   : > { %v202_v0 = vld [vmem:[%s791_s1] sm:$0xff] (!%p163_p10)  ;;  %v203_v1 = vld [vmem:[%s791_s1 + $0x8] sm:$0xff] (!%p163_p10)  ;;  %v204_v2 = vld [vmem:[%s791_s1 + $0x10] sm:$0xff] (!%p163_p10)  ;;  %v639_v3 = vmov (!%p163_p10), 0.0|0.0   ;;  %vm640_vm0 = vmmov (!%p163_p10), 0   ;;  %v641_v6 = vmov (!%p163_p10), 0.0  }
   0xf   : > { %166 = sbr.rel (%p163_p10) target bundleno = 475 (0x1db), region = 32  ;;  %495 = vmatprep.subr.bf16.mxu0 (!%p163_p10), %v639_v3  ;;  %v496_v4 = vpack.c.bf16 (!%p163_p10), %v203_v1, %v202_v0  ;;  %v205_v5 = vld [vmem:[%s791_s1 + $0x18] sm:$0xff] (!%p163_p10)  ;;  %487 = vmatprep.mubr.msk.f32.mxu0 (!%p163_p10), %vm640_vm0, %v641_v6  ;;  %p189_p11 = scmp.lt.s32.totalorder (!%p163_p10), %s629_s15, 1  ;;  %vm206_vm1 = vcmask (!%p163_p10), 261120   ;;  %v284_v9 = vld [vmem:[%s792_s2] sm:$0xff] (!%p163_p10)  ;;  %vm281_vm2 = vcmask (!%p163_p10), 64512  }
  0x10   : > { %490 = vmatprep.subr.mxu1 (!%p163_p10), %v641_v6  ;;  %492 = vmatprep.mubr.msk.f32.mxu1 (!%p163_p10), %vm640_vm0, %v641_v6  ;;  %v499_v7 = vpack.c.bf16 (!%p163_p10), %v205_v5, %v204_v2  ;;  %s186_s21 = sand.u32 (!%p163_p10), 1, %s621_s13   ;;  %s469_s28 = sshll.u32 (!%p163_p10), %s629_s15, 7 }
  0x11   : > { %497 = vmatpush3.bf16.msra.mxu0 (!%p163_p10), %v496_v4  ;;  %491 = vmatpush3.msra.mxu1 (!%p163_p10), %v284_v9  ;;  %s464_s23 = sshll.u32 (!%p163_p10), %s186_s21, 3  ;;  %s745_s4 = scalar_lea.hbm (!%p163_p10), %s793_s3, %s469_s28 }
  0x12   : > { %498 = vmatprep.subr.bf16.mxu0 (!%p163_p10), %v639_v3  ;;  %s188_s26 = scalar_lea.vmem (!%p163_p10), [#allocation3], %s464_s23  ;;  %s361_s5 = scalar_lea.sflag (!%p163_p10), [#allocation4], %s186_s21 }
  0x13   : > { %s375_s27 = sshll.u32 (!%p163_p10), %s188_s26, 4  ;;  %s740_s27 = int_to_ptr.vmem [resolvable:$true] %s375_s27 }
  0x14   : > { %s559_s6 = scalar_lea.vmem (!%p163_p10), %s740_s27, 128 }
  0x15   : > { %500 = vmatpush3.bf16.msra.mxu0 (!%p163_p10), %v499_v7  ;;  %p560_p12 = scmp.ne.s32.totalorder (!%p163_p10), %s740_s27, %s559_s6 }
  0x16   : > { %s190_s7 = scalar_select %p189_p11, %s629_s15, 1 }
  0x17   : > { %p561_p13 = pnand %p560_p12, %p703_p4  ;;  %s642_s15 = smov [#allocation3]  }
  0x18   : > { %s465_s8 = sshll.u32 %s190_s7, 3  ;;  %s563_s7 = sshll.u32 %s642_s15, 4  ;;  %s564_s7 = int_to_ptr.vmem [resolvable:$false] %s563_s7 }
  0x19   : > { %s192_s11 = scalar_lea.vmem %s790_s0, %s465_s8  ;;  %p562_p0 = pneg %p561_p13 }
  0x1a   : > { %v201_v8 = vld [vmem:[%s192_s11] sm:$0xff]  ;;  %s565_s8 = scalar_lea.vmem %s564_s7, 256  ;;  %p566_p1 = scmp.lt.s32.totalorder %s740_s27, %s564_s7 }
  0x1b   : > { %488 = vmatmul.mubr.msk.f32.vlgmr.msra.gmra.mrb[0].mxu0 %vm206_vm1, %v201_v8  ;;  %p567_p2 = scmp.lt.s32.totalorder %s565_s8, %s559_s6 }
  0x1d   : > { %p568_p3 = por %p567_p2, %p566_p1 }
  0x1f   : > { %p569_p5 = pnand %p568_p3, %p562_p0 }
  0xee   : > { %v276_v10 = vpop.f32.mrb[0].mxu0 }
  0xef   : > { %v280_v11 = vmul.f32 0.125, %v276_v10  ;;  %v489_v12 = vpop.f32.mrb[1].mxu0 }
  0xf1   : > { %282 = vst.msk [vmem:[#allocation2] sm:$0xff] %vm281_vm2, %v280_v11 }
  0xf8   : > { %v283_v13 = vld [vmem:[#allocation2] sm:$0xff] }
  0xf9   : > { %493 = vmatmul.mubr.msk.f32.vlgmr.msra.gmra.mrb[0].mxu1 %vm281_vm2, %v283_v13 }
 0x1cc   : > { %v355_v14 = vpop.f32.mrb[0].mxu1 }
 0x1cd   : > { %359 = vst [vmem:[%s188_s26] sm:$0xff] %v355_v14  ;;  %v494_v15 = vpop.f32.mrb[1].mxu1 }
 0x1ce   : > { %572 = shalt.err (!%p569_p5)
}
 0x1cf   : > { %s573_s9 = scalar_lea.hbm %s745_s4, 128  ;;  %s577_s18 = scalar_lea.hbm %s793_s3, 256 }
 0x1d0   : > { %p574_p6 = scmp.ne.s32.totalorder %s745_s4, %s573_s9  ;;  %p578_p10 = scmp.lt.u32.totalorder %s745_s4, %s793_s3 }
 0x1d1   : > { %p579_p11 = scmp.lt.u32.totalorder %s577_s18, %s573_s9  ;;  %p581_p13 = scmp.lt.u32.totalorder %s573_s9, %s745_s4 }
 0x1d2   : > { %p575_p7 = pnand %p574_p6, %p703_p4 }
 0x1d3   : > { %p580_p12 = por %p579_p11, %p578_p10 }
 0x1d4   : > { %p576_p9 = pneg %p575_p7 }
 0x1d5   : > { %p582_p0 = por %p581_p13, %p580_p12 }
 0x1d7   : > { %p583_p1 = pnand %p582_p0, %p576_p9 }
 0x1d9   : > { %586 = shalt.err (!%p583_p1)
}
 0x1da   : > { %501 = dma.vmem_to_hbm [thread:$0]  (%p703_p4), %s740_s27, 128, %s745_s4, %s361_s5  }
 0x1db PF: > { %p507_p2 = scmp.ge.s32.totalorder %s637_s17, 2  ;;  %s387_s23 = sand.u32 1, %s617_s12  }
 0x1dc   : > { %s388_s26 = scalar_lea.sflag [#allocation4], %s387_s23 }
 0x1dd   : > { %p504_p3 = pnand %p507_p2, %p710_p8 }
 0x1df   : > { %612 = dma.done.wait (!%p504_p3), %s388_s26, 128  }
 0x1e0   : > { %614 = vsyncadd (!%p504_p3), %s388_s26, 4294967168  ;;  %s16_s17 = sadd.s32 1, %s637_s17   ;;  %s796_s12 = smov %s621_s13 }
 0x1e1   : > { %p13_p5 = scmp.ge.s32.totalorder %s16_s17, 4   ;;  %s797_s13 = smov %s625_s14 }
 0x1e2   : > { %s798_s14 = smov %s716_s25  ;;  %s799_s15 = smov %s633_s16 }
 0x1e3   : > { %s800_s16 = smov %s802_s20  ;;  %15 = sbr.rel (!%p13_p5) target bundleno = 4 (0x4), region = 74 }
 0x1ea   :  { %393 = vsyncpa [#allocation4], 1 }
 0x1eb   :  { %395 = vsyncpa [#allocation4 + $0x1], 1 }

</bundles_post_ra>
